<compile_context>
chip_gen: v5e
topology: v5e:2x2
jax: 0.10.0
libtpu: 0.0.40
codegen_flags: <defaults>
</compile_context>

<pallas_src>
import functools

import jax
import jax.numpy as jnp
from jax import lax
from jax.experimental import pallas as pl
from jax.experimental.pallas import tpu as pltpu

EPS = 1e-5
NUM_GROUPS = 16
_VMEM_BLOCK_BUDGET_BYTES = 2 * 1024 * 1024   # per-slab budget (~roofline knee, safe on v5e)
_VMEM_LIMIT_BYTES = 32 * 1024 * 1024         # scoped-VMEM limit; safe on v5e/v6e/v7x


def _group_norm_kernel(x_ref, gamma_ref, beta_ref, o_ref, *, eps, inv_n):
    """x_ref/o_ref block: (bpb, gpb, L) with L = Cg*H*W; gamma/beta: (gpb, L).

    Three streaming passes over the VMEM-resident block; x is reloaded from
    the block ref in each pass so no f32 slab stays live across passes.
    """
    # Pass 1: per-group mean.
    x1 = x_ref[...].astype(jnp.float32)
    mean = jnp.sum(x1, axis=-1, keepdims=True) * inv_n            # (bpb, gpb, 1)

    # Pass 2: centered (biased, like torch) variance — robust to large means.
    x2 = x_ref[...].astype(jnp.float32)
    d = x2 - mean
    var = jnp.sum(d * d, axis=-1, keepdims=True) * inv_n          # (bpb, gpb, 1)
    inv = lax.rsqrt(var + eps)

    # Pass 3: normalize + affine, streamed straight to the output block.
    gamma = gamma_ref[...][None]                                  # (1, gpb, L) f32
    beta = beta_ref[...][None]                                    # (1, gpb, L) f32
    x3 = x_ref[...].astype(jnp.float32)
    o_ref[...] = (((x3 - mean) * inv) * gamma + beta).astype(o_ref.dtype)


def _choose_block_sizes(N, G, bytes_per_group, budget):
    # Groups per block: a whole image's worth of groups if it fits the budget,
    # otherwise a sublane-aligned slice of 8 groups (G == 16 here).
    if G * bytes_per_group <= budget or G <= 8 or G % 8 != 0:
        gpb = G
    else:
        gpb = 8

    # Batches per block: largest divisor of N whose slab fits the budget.
    per_batch_row = gpb * bytes_per_group
    bpb = 1
    for d in range(N, 0, -1):
        if N % d == 0 and d * per_batch_row <= budget:
            bpb = d
            break

    # If everything collapsed to one grid step, split the batch so both
    # TensorCores on v7x get work (grid axes are "parallel").
    if N > 1 and (N // bpb) * (G // gpb) == 1:
        for d in range(N // 2, 0, -1):
            if N % d == 0:
                bpb = d
                break
    return bpb, gpb


def my_group_norm(x, gamma, beta, num_groups=NUM_GROUPS, eps=EPS):
    """GroupNorm forward. x: (N, C, H, W); gamma, beta: (C,)."""
    N, C, H, W = x.shape
    assert C % num_groups == 0, "num_channels must be divisible by 16"
    G = num_groups
    Cg = C // G
    HW = H * W
    L = Cg * HW

    # Lane-dense, fully sublane-packed view of contiguous NCHW (metadata-only).
    x_r = x.reshape(N, G, L)

    # Lane-expand gamma/beta to (G, Cg*HW) f32 once in the wrapper so the
    # normalize pass is pure streaming elementwise; VMEM-resident via BlockSpec.
    gamma_exp = jnp.broadcast_to(
        gamma.astype(jnp.float32).reshape(G, Cg, 1), (G, Cg, HW)).reshape(G, L)
    beta_exp = jnp.broadcast_to(
        beta.astype(jnp.float32).reshape(G, Cg, 1), (G, Cg, HW)).reshape(G, L)

    bytes_per_group = L * x.dtype.itemsize
    bpb, gpb = _choose_block_sizes(N, G, bytes_per_group, _VMEM_BLOCK_BUDGET_BYTES)
    # TODO(synk): if a single 8-group slab still exceeds the VMEM budget (very
    # large spatial), tile Cg*HW with an "arbitrary" reduction axis and
    # pl.when-init/finalized sum / sum-of-squares accumulators.

    kernel = functools.partial(_group_norm_kernel, eps=eps, inv_n=1.0 / float(L))

    out = pl.pallas_call(
        kernel,
        out_shape=jax.ShapeDtypeStruct((N, G, L), x.dtype),
        grid=(N // bpb, G // gpb),
        in_specs=[
            pl.BlockSpec((bpb, gpb, L), lambda b, g: (b, g, 0)),
            pl.BlockSpec((gpb, L), lambda b, g: (g, 0)),
            pl.BlockSpec((gpb, L), lambda b, g: (g, 0)),
        ],
        out_specs=pl.BlockSpec((bpb, gpb, L), lambda b, g: (b, g, 0)),
        compiler_params=pltpu.CompilerParams(
            dimension_semantics=("parallel", "parallel"),
            vmem_limit_bytes=_VMEM_LIMIT_BYTES),
    )(x_r, gamma_exp, beta_exp)

    return out.reshape(N, C, H, W)


def group_norm_reference(x, gamma, beta, num_groups=NUM_GROUPS):
    N, C, H, W = x.shape
    Cg = C // num_groups
    xg = x.reshape(N, num_groups, Cg * H * W).astype(jnp.float32)
    mean = xg.mean(axis=-1, keepdims=True)
    var = ((xg - mean) ** 2).mean(axis=-1, keepdims=True)
    xn = (xg - mean) * lax.rsqrt(var + EPS)
    xn = xn.reshape(N, C, H, W)
    return (xn * gamma[None, :, None, None] + beta[None, :, None, None]).astype(x.dtype)


if __name__ == "__main__":
    # Small shapes consistent with the module: channels must be a multiple of 16.
    N, C, H, W = 2, 32, 16, 16
    key = jax.random.PRNGKey(0)
    kx, kg, kb = jax.random.split(key, 3)
    x = jax.random.normal(kx, (N, C, H, W), dtype=jnp.float32)
    # nn.GroupNorm default init is weight=1, bias=0; use deterministic
    # non-trivial values to exercise the affine path.
    gamma = 1.0 + 0.1 * jax.random.normal(kg, (C,), dtype=jnp.float32)
    beta = 0.1 * jax.random.normal(kb, (C,), dtype=jnp.float32)

    out = my_group_norm(x, gamma, beta)
    out = jax.block_until_ready(out)

    ref = group_norm_reference(x, gamma, beta)
    assert out.shape == (N, C, H, W)
    assert jnp.allclose(out, ref, atol=1e-4, rtol=1e-5), (
        float(jnp.max(jnp.abs(out - ref))))
    print("KERNEL_OK")
</pallas_src>

<mosaic_0001>
module attributes {stable_mosaic.version = 11 : i64} {
  func.func @_group_norm_kernel(%arg0: i32, %arg1: i32, %arg2: memref<1x16x512xf32, #tpu.memory_space<vmem>>, %arg3: memref<16x512xf32, #tpu.memory_space<vmem>>, %arg4: memref<16x512xf32, #tpu.memory_space<vmem>>, %arg5: memref<1x16x512xf32, #tpu.memory_space<vmem>>) attributes {dimension_semantics = [#tpu.dimension_semantics<parallel>, #tpu.dimension_semantics<parallel>], iteration_bounds = array<i64: 2, 1>, scalar_prefetch = 0 : i64, scratch_operands = 0 : i64, tpu.core_type = #tpu.core_type<tc>, window_params = [{transform_indices = @transform_0, window_bounds = array<i64: 1, 16, 512>}, {transform_indices = @transform_1, window_bounds = array<i64: 16, 512>}, {transform_indices = @transform_2, window_bounds = array<i64: 16, 512>}, {transform_indices = @transform_3, window_bounds = array<i64: 1, 16, 512>}]} {
    %c0 = arith.constant 0 : index
    %c0_0 = arith.constant 0 : index
    %c0_1 = arith.constant 0 : index
    %0 = vector.load %arg2[%c0, %c0_0, %c0_1] : memref<1x16x512xf32, #tpu.memory_space<vmem>>, vector<1x16x512xf32>
    %cst = arith.constant dense<0.000000e+00> : vector<1x16xf32>
    %1 = vector.multi_reduction <add>, %0, %cst [2] : vector<1x16x512xf32> to vector<1x16xf32>
    %2 = vector.shape_cast %1 : vector<1x16xf32> to vector<1x16x1xf32>
    %cst_2 = arith.constant 0.001953125 : f32
    %3 = vector.broadcast %cst_2 : f32 to vector<1x16x1xf32>
    %4 = arith.mulf %2, %3 : vector<1x16x1xf32>
    %c0_3 = arith.constant 0 : index
    %c0_4 = arith.constant 0 : index
    %c0_5 = arith.constant 0 : index
    %5 = vector.load %arg2[%c0_3, %c0_4, %c0_5] : memref<1x16x512xf32, #tpu.memory_space<vmem>>, vector<1x16x512xf32>
    %6 = vector.broadcast %4 : vector<1x16x1xf32> to vector<1x16x512xf32>
    %7 = arith.subf %5, %6 : vector<1x16x512xf32>
    %8 = arith.mulf %7, %7 : vector<1x16x512xf32>
    %cst_6 = arith.constant dense<0.000000e+00> : vector<1x16xf32>
    %9 = vector.multi_reduction <add>, %8, %cst_6 [2] : vector<1x16x512xf32> to vector<1x16xf32>
    %10 = vector.shape_cast %9 : vector<1x16xf32> to vector<1x16x1xf32>
    %cst_7 = arith.constant 0.001953125 : f32
    %11 = vector.broadcast %cst_7 : f32 to vector<1x16x1xf32>
    %12 = arith.mulf %10, %11 : vector<1x16x1xf32>
    %cst_8 = arith.constant 9.99999974E-6 : f32
    %13 = vector.broadcast %cst_8 : f32 to vector<1x16x1xf32>
    %14 = arith.addf %12, %13 : vector<1x16x1xf32>
    %15 = math.rsqrt %14 : vector<1x16x1xf32>
    %c0_9 = arith.constant 0 : index
    %c0_10 = arith.constant 0 : index
    %16 = vector.load %arg3[%c0_9, %c0_10] : memref<16x512xf32, #tpu.memory_space<vmem>>, vector<16x512xf32>
    %17 = vector.shape_cast %16 : vector<16x512xf32> to vector<1x16x512xf32>
    %c0_11 = arith.constant 0 : index
    %c0_12 = arith.constant 0 : index
    %18 = vector.load %arg4[%c0_11, %c0_12] : memref<16x512xf32, #tpu.memory_space<vmem>>, vector<16x512xf32>
    %19 = vector.shape_cast %18 : vector<16x512xf32> to vector<1x16x512xf32>
    %c0_13 = arith.constant 0 : index
    %c0_14 = arith.constant 0 : index
    %c0_15 = arith.constant 0 : index
    %20 = vector.load %arg2[%c0_13, %c0_14, %c0_15] : memref<1x16x512xf32, #tpu.memory_space<vmem>>, vector<1x16x512xf32>
    %21 = vector.broadcast %4 : vector<1x16x1xf32> to vector<1x16x512xf32>
    %22 = arith.subf %20, %21 : vector<1x16x512xf32>
    %23 = vector.broadcast %15 : vector<1x16x1xf32> to vector<1x16x512xf32>
    %24 = arith.mulf %22, %23 : vector<1x16x512xf32>
    %25 = arith.mulf %24, %17 : vector<1x16x512xf32>
    %26 = arith.addf %25, %19 : vector<1x16x512xf32>
    %c0_16 = arith.constant 0 : index
    %c0_17 = arith.constant 0 : index
    %c0_18 = arith.constant 0 : index
    %27 = vector.load %arg5[%c0_16, %c0_17, %c0_18] : memref<1x16x512xf32, #tpu.memory_space<vmem>>, vector<1x16x512xf32>
    tpu.vector_store %arg5[%c0_16, %c0_17, %c0_18], %26 {strides = array<i32>} : memref<1x16x512xf32, #tpu.memory_space<vmem>>, vector<1x16x512xf32>,
    return
  }
  func.func @transform_0(%arg0: i32, %arg1: i32) -> (i32, i32, i32) {
    %c0_i32 = arith.constant 0 : i32
    %c0_i32_0 = arith.constant 0 : i32
    return %arg0, %arg1, %c0_i32 : i32, i32, i32
  }
  func.func @transform_1(%arg0: i32, %arg1: i32) -> (i32, i32) {
    %c0_i32 = arith.constant 0 : i32
    %c0_i32_0 = arith.constant 0 : i32
    return %arg1, %c0_i32 : i32, i32
  }
  func.func @transform_2(%arg0: i32, %arg1: i32) -> (i32, i32) {
    %c0_i32 = arith.constant 0 : i32
    %c0_i32_0 = arith.constant 0 : i32
    return %arg1, %c0_i32 : i32, i32
  }
  func.func @transform_3(%arg0: i32, %arg1: i32) -> (i32, i32, i32) {
    %c0_i32 = arith.constant 0 : i32
    %c0_i32_0 = arith.constant 0 : i32
    return %arg0, %arg1, %c0_i32 : i32, i32, i32
  }
}

</mosaic_0001>

<bundles_post_ra>
// kernel: tpu_custom_call.1
= control target key start
LH: loop header
LB: loop body
LE: loop exit
PB: predicated region body
PF: predicated region fallthrough
CT: control target
= control target key end

     0   :  { %8 = vsyncpa [#allocation3], 0  ;;  %s1018_s0 = inlined_call_operand.hbm [shape: f32[2,16,512], index: 0, kind: input, shape index: {}]   ;;  %s1019_s1 = inlined_call_operand.hbm [shape: f32[16,512], index: 1, kind: input, shape index: {}]   ;;  %s1020_s2 = inlined_call_operand.hbm [shape: f32[16,512], index: 2, kind: input, shape index: {}]   ;;  %s1021_s3 = inlined_call_operand.hbm [shape: f32[2,16,512], index: 3, kind: output, shape index: {}]  }
   0x1   :  { %10 = vsyncpa [#allocation3 + $0x1], 0 }
   0x2   :  { %11 = vsyncpa [#allocation6], 0 }
   0x3   :  { %12 = vsyncpa [#allocation4], 0 }
   0x4   :  { %14 = vsyncpa [#allocation4 + $0x1], 0  ;;  %s828_s12 = smov 0   ;;  %s830_s13 = smov 0  }
   0x5   :  { %s832_s14 = smov 0   ;;  %s834_s15 = smov 0  }
   0x6   :  { %s836_s16 = smov 0   ;;  %s838_s17 = smov 0  }
   0x7 LB: > { %s512_s18 = sadd.s32 4294967295, %s800_s17   ;;  %s513_s19 = sadd.s32 4294967294, %s800_s17   ;;  %s800_s17 = sphi %s838_s17, %s20_s17   ;;  %s796_s16 = sphi %s836_s16, %s1031_s16   ;;  %s792_s15 = sphi %s834_s15, %s1030_s15   ;;  %s788_s14 = sphi %s832_s14, %s1029_s14   ;;  %s784_s13 = sphi %s830_s13, %s1028_s13   ;;  %s780_s12 = sphi %s828_s12, %s1027_s12  }
   0x8   : > { %p54_p0 = scmp.ne.s32.totalorder %s784_s13, %s780_s12  ;;  %p864_p1 = scmp.eq.s32.totalorder %s512_s18, 0 }
   0x9   : > { %p138_p2 = scmp.eq.s32.totalorder %s513_s19, 1  ;;  %p514_p4 = scmp.ge.s32.totalorder %s800_s17, 1 }
   0xa   : > { %p870_p3 = por %p864_p1, %p54_p0  ;;  %p145_p6 = scmp.lt.s32.totalorder %s800_s17, 3 }
   0xb   : > { %p875_p5 = por %p138_p2, %p54_p0  ;;  %s160_s25 = sshll.u32 %s1019_s1, 4  ;;  %s161_s25 = int_to_ptr.hbm [resolvable:$true] %s160_s25 }
   0xc   : > { %p883_p7 = pnand %p514_p4, %p145_p6  ;;  %s802_s27 = smov [#allocation5]  }
   0xd   : > { %s162_s28 = sshll.u32 %s802_s27, 4  ;;  %p517_p10 = scmp.ge.s32.totalorder %s800_s17, 2  ;;  %s163_s28 = int_to_ptr.vmem [resolvable:$true] %s162_s28 }
   0xe   : > { %p545_p8 = pneg %p883_p7  ;;  %s178_s4 = sshll.u32 %s1020_s2, 4  ;;  %s179_s4 = int_to_ptr.hbm [resolvable:$true] %s178_s4 }
   0xf   : > { %s803_s5 = smov 512   ;;  %s804_s6 = smov 32  }
  0x10   : > { %p546_p9 = pnand %p545_p8, %p864_p1  ;;  %s805_s7 = smov [#allocation7]  }
  0x11   : > { %s180_s8 = sshll.u32 %s805_s7, 4  ;;  %p132_p11 = scmp.eq.s32.totalorder %s512_s18, 1  ;;  %s181_s8 = int_to_ptr.vmem [resolvable:$true] %s180_s8 }
  0x12   : > { %548 = dma.hbm_to_vmem [thread:$0]  (!%p546_p9), %s161_s25, 1024, %s163_s28, [#allocation6], %s803_s5, %s803_s5, %s804_s6  }
  0x13   : > { %551 = dma.hbm_to_vmem [thread:$0]  (!%p546_p9), %s179_s4, 1024, %s181_s8, [#allocation6], %s803_s5, %s803_s5, %s804_s6  }
  0x14   : > { %s32_s9 = sadd.s32 1, %s796_s16  ;;  %s41_s10 = sadd.s32 1, %s788_s14 }
  0x15   : > { %p34_p12 = scmp.ge.s32.totalorder %s32_s9, 2  ;;  %p48_p13 = scmp.ne.s32.totalorder %s788_s14, %s784_s13 }
  0x16   : > { %p49_p0 = scmp.eq.s32.totalorder %s800_s17, 0  ;;  %p562_p4 = scmp.lt.s32.totalorder %s800_s17, 2 }
  0x17   : > { %s1033_s9 = smov (%p34_p12, %s32_s9), 0  ;;  %p910_p2 = por %p132_p11, %p48_p13 }
  0x18   : > { %s36_s19 = ssub.s32 %s796_s16, %s1033_s9  ;;  %s194_s23 = sand.u32 1, %s788_s14  }
  0x19   : > { %p39_p6 = scmp.eq.s32.totalorder %s36_s19, 0  ;;  %p50_p8 = por %p49_p0, %p48_p13 }
  0x1a   : > { %s518_s24 = sshll.u32 %s194_s23, 6  ;;  %s531_s18 = sshll.u32 %s796_s16, 6 }
  0x1b   : > { %s920_s25 = scalar_select %p39_p6, %s788_s14, %s41_s10  }
  0x1c   : > { %s206_s29 = scalar_lea.hbm %s1018_s0, %s531_s18  ;;  %s198_s4 = scalar_lea.vmem [#allocation2], %s518_s24 }
  0x1d   : > { %s207_s30 = sshll.u32 %s206_s29, 4  ;;  %s209_s7 = sshll.u32 %s198_s4, 4  ;;  %s208_s30 = int_to_ptr.hbm [resolvable:$true] %s207_s30  ;;  %s210_s7 = int_to_ptr.vmem [resolvable:$true] %s209_s7 }
  0x1e   : > { %p553_p9 = pnand %p562_p4, %p50_p8  ;;  %s195_s8 = scalar_lea.sflag [#allocation3], %s194_s23 }
  0x1f   : > { %221 = sbr.rel (%p883_p7) target bundleno = 333 (0x14d), region = 32  ;;  %s933_s10 = sand.u32 (!%p883_p7), 1, %s784_s13  }
  0x20   : > { %555 = dma.hbm_to_vmem [thread:$0]  (!%p553_p9), %s208_s30, 1024, %s210_s7, %s195_s8, %s803_s5, %s803_s5, %s804_s6  }
  0x21   : > { %s522_s19 = sshll.u32 (!%p883_p7), %s933_s10, 6  ;;  %s224_s24 = scalar_lea.sflag (!%p883_p7), [#allocation3], %s933_s10 }
  0x22   : > { %s227_s18 = scalar_lea.vmem (!%p883_p7), [#allocation2], %s522_s19 }
  0x24   : > { %767 = dma.done.wait (%p870_p3), %s224_s24, 1024  }
  0x25   : > { %769 = vsyncadd (%p870_p3), %s224_s24, 4294966272 }
  0x26   : > { %771 = dma.done.wait (%p864_p1), [#allocation6], 2048  }
  0x27   : > { %773 = vsyncadd (%p864_p1), [#allocation6], 4294965248  ;;  %v265_v0 = vld [vmem:[%s227_s18] sm:$0xff]  ;;  %v266_v1 = vld [vmem:[%s227_s18 + $0x8] sm:$0xff]  ;;  %s532_s20 = sshll.u32 %s792_s15, 6  ;;  %s966_s21 = scalar_lea.vmem [#allocation8], %s522_s19 }
  0x28   : > { %v267_v2 = vld [vmem:[%s227_s18 + $0x10] sm:$0xff]  ;;  %v273_v3 = vadd.f32 %v266_v1, %v265_v0  ;;  %v269_v4 = vld [vmem:[%s227_s18 + $0x20] sm:$0xff]  ;;  %v270_v5 = vld [vmem:[%s227_s18 + $0x28] sm:$0xff]  ;;  %s398_s5 = scalar_lea.hbm %s1021_s3, %s532_s20  ;;  %s399_s6 = sshll.u32 %s966_s21, 4  ;;  %s400_s6 = int_to_ptr.vmem [resolvable:$true] %s399_s6 }
  0x29   : > { %v268_v6 = vld [vmem:[%s227_s18 + $0x18] sm:$0xff]  ;;  %v278_v8 = vadd.f32 %v270_v5, %v269_v4  ;;  %v271_v9 = vld [vmem:[%s227_s18 + $0x30] sm:$0xff]  ;;  %v335_v54 = vld [vmem:[#allocation5] sm:$0xff]  ;;  %s401_s23 = sshll.u32 %s398_s5, 4  ;;  %s384_s27 = scalar_lea.sflag [#allocation4], %s933_s10  ;;  %s402_s23 = int_to_ptr.hbm [resolvable:$true] %s401_s23 }
  0x2a   : > { %v274_v7 = vadd.f32 %v273_v3, %v267_v2  ;;  %v272_v12 = vld [vmem:[%s227_s18 + $0x38] sm:$0xff]  ;;  %v336_v55 = vld [vmem:[#allocation5 + $0x8] sm:$0xff]  ;;  %v337_v56 = vld [vmem:[#allocation5 + $0x10] sm:$0xff]  ;;  %s728_s28 = sshra.s32 %s402_s23, 4  ;;  %s734_s7 = scalar_lea.hbm %s1021_s3, 128  ;;  %s729_s28 = int_to_ptr.hbm [resolvable:$true] %s728_s28 }
  0x2b   : > { %v279_v11 = vadd.f32 %v278_v8, %v271_v9  ;;  %v338_v57 = vld [vmem:[#allocation5 + $0x18] sm:$0xff]  ;;  %s730_s29 = scalar_lea.hbm %s729_s28, 64  ;;  %p735_p11 = scmp.lt.s32.totalorder %s729_s28, %s1021_s3 }
  0x2c   : > { %v275_v10 = vadd.f32 %v274_v7, %v268_v6  ;;  %p731_p1 = scmp.ne.s32.totalorder %s729_s28, %s730_s29  ;;  %p736_p12 = scmp.lt.s32.totalorder %s734_s7, %s730_s29 }
  0x2d   : > { %v280_v13 = vadd.f32 %v279_v11, %v272_v12 }
  0x2e   : > { %276 = vadd.xlane.f32.xlu0 %v275_v10  ;;  %p732_p3 = pnand %p731_p1, %p910_p2  ;;  %p737_p13 = por %p736_p12, %p735_p11 }
  0x30   : > { %p733_p7 = pneg %p732_p3 }
  0x32   : > { %p738_p0 = pnand %p737_p13, %p733_p7 }
  0x36   : > { %281 = vadd.xlane.f32.xlu0 %v280_v13 }
  0xa1   : > { %v277_v14 = vpop.xlane.xlu0 %276 }
  0xa2   : > { %v283_v15 = vmul.f32 0.001953125, %v277_v14 }
  0xa4   : > { %v285_v16 = vsub.f32 %v265_v0, %v283_v15  ;;  %v286_v17 = vsub.f32 %v266_v1, %v283_v15  ;;  %v287_v18 = vsub.f32 %v267_v2, %v283_v15  ;;  %v288_v19 = vsub.f32 %v268_v6, %v283_v15  ;;  %v343_v0 = vld [vmem:[#allocation7] sm:$0xff]  ;;  %v344_v1 = vld [vmem:[#allocation7 + $0x8] sm:$0xff]  ;;  %v345_v2 = vld [vmem:[#allocation7 + $0x10] sm:$0xff] }
  0xa5   : > { %v339_v15 = vld [vmem:[#allocation5 + $0x20] sm:$0xff] }
  0xa6   : > { %v293_v20 = vmul.f32 %v285_v16, %v285_v16  ;;  %v294_v21 = vmul.f32 %v286_v17, %v286_v17  ;;  %v295_v22 = vmul.f32 %v287_v18, %v287_v18  ;;  %v296_v26 = vmul.f32 %v288_v19, %v288_v19 }
  0xa8   : > { %v301_v23 = vadd.f32 %v294_v21, %v293_v20 }
  0xa9   : > { %v282_v24 = vpop.xlane.xlu0 %281 }
  0xaa   : > { %v284_v25 = vmul.f32 0.001953125, %v282_v24  ;;  %v302_v27 = vadd.f32 %v301_v23, %v295_v22  ;;  %v347_v24 = vld [vmem:[#allocation7 + $0x20] sm:$0xff] }
  0xac   : > { %v947_v28 = vsub.f32 %v269_v4, %v284_v25  ;;  %v949_v29 = vsub.f32 %v270_v5, %v284_v25  ;;  %v303_v30 = vadd.f32 %v302_v27, %v296_v26  ;;  %v951_v31 = vsub.f32 %v271_v9, %v284_v25  ;;  %v346_v4 = vld [vmem:[#allocation7 + $0x18] sm:$0xff]  ;;  %v349_v26 = vld [vmem:[#allocation7 + $0x30] sm:$0xff] }
  0xad   : > { %v953_v32 = vsub.f32 %v272_v12, %v284_v25  ;;  %v348_v25 = vld [vmem:[#allocation7 + $0x28] sm:$0xff]  ;;  %v350_v27 = vld [vmem:[#allocation7 + $0x38] sm:$0xff] }
  0xae   : > { %304 = vadd.xlane.f32.xlu1 %v303_v30  ;;  %v297_v33 = vmul.f32 %v947_v28, %v947_v28  ;;  %v298_v34 = vmul.f32 %v949_v29, %v949_v29  ;;  %v299_v35 = vmul.f32 %v951_v31, %v951_v31 }
  0xaf   : > { %v300_v37 = vmul.f32 %v953_v32, %v953_v32 }
  0xb0   : > { %v306_v36 = vadd.f32 %v298_v34, %v297_v33 }
  0xb2   : > { %v307_v38 = vadd.f32 %v306_v36, %v299_v35 }
  0xb4   : > { %v308_v39 = vadd.f32 %v307_v38, %v300_v37 }
  0xb6   : > { %309 = vadd.xlane.f32.xlu1 %v308_v39 }
 0x121   : > { %v305_v40 = vpop.xlane.xlu1 %304 }
 0x122   : > { %v311_v41 = vmul.f32 0.001953125, %v305_v40 }
 0x124   : > { %v313_v42 = vadd.f32 1e-05, %v311_v41 }
 0x126   : > { %620 = vrsqrt.f32 %v313_v42  ;;  %vm321_vm1 = vweird.f32 %v313_v42 }
 0x129   : > { %v310_v43 = vpop.xlane.xlu1 %309 }
 0x12a   : > { %v312_v44 = vmul.f32 0.001953125, %v310_v43 }
 0x12c   : > { %v621_v45 = vpop.eup %620  ;;  %v314_v46 = vadd.f32 1e-05, %v312_v44 }
 0x12d   : > { %v316_v47 = vmul.f32 %v621_v45, %v313_v42  ;;  %vm322_vm0 = vweird.f32 %v621_v45 }
 0x12e   : > { %622 = vrsqrt.f32 %v314_v46  ;;  %vm323_vm2 = vmor %vm321_vm1, %vm322_vm0  ;;  %vm331_vm4 = vweird.f32 %v314_v46 }
 0x12f   : > { %v317_v48 = vmul.f32 %v621_v45, %v316_v47 }
 0x131   : > { %v318_v49 = vmul.f32 0.5, %v317_v48 }
 0x133   : > { %v319_v50 = vsub.f32 1.5, %v318_v49 }
 0x134   : > { %v623_v51 = vpop.eup %622 }
 0x135   : > { %v320_v52 = vmul.f32 %v621_v45, %v319_v50  ;;  %v326_v53 = vmul.f32 %v623_v51, %v314_v46  ;;  %vm332_vm3 = vweird.f32 %v623_v51 }
 0x136   : > { %vm333_vm5 = vmor %vm331_vm4, %vm332_vm3 }
 0x137   : > { %v324_v58 = vsel %vm323_vm2, %v621_v45, %v320_v52  ;;  %v327_v59 = vmul.f32 %v623_v51, %v326_v53 }
 0x138   : > { %v351_v60 = vmul.f32 %v324_v58, %v285_v16  ;;  %v352_v61 = vmul.f32 %v324_v58, %v286_v17  ;;  %v353_v62 = vmul.f32 %v324_v58, %v287_v18  ;;  %v354_v63 = vmul.f32 %v324_v58, %v288_v19  ;;  %v340_v16 = vld [vmem:[#allocation5 + $0x28] sm:$0xff]  ;;  %v341_v17 = vld [vmem:[#allocation5 + $0x30] sm:$0xff]  ;;  %v342_v18 = vld [vmem:[#allocation5 + $0x38] sm:$0xff] }
 0x139   : > { %v328_v3 = vmul.f32 0.5, %v327_v59 }
 0x13a   : > { %v359_v5 = vmul.f32 %v351_v60, %v335_v54  ;;  %v360_v6 = vmul.f32 %v352_v61, %v336_v55  ;;  %v361_v7 = vmul.f32 %v353_v62, %v337_v56  ;;  %v362_v8 = vmul.f32 %v354_v63, %v338_v57 }
 0x13b   : > { %v329_v9 = vsub.f32 1.5, %v328_v3 }
 0x13c   : > { %v367_v10 = vadd.f32 %v359_v5, %v343_v0  ;;  %v368_v11 = vadd.f32 %v360_v6, %v344_v1  ;;  %v369_v12 = vadd.f32 %v361_v7, %v345_v2  ;;  %v370_v13 = vadd.f32 %v362_v8, %v346_v4 }
 0x13d   : > { %v330_v14 = vmul.f32 %v623_v51, %v329_v9 }
 0x13e   : > { %375 = vst [vmem:[%s966_s21] sm:$0xff] %v367_v10 }
 0x13f   : > { %376 = vst [vmem:[%s966_s21 + $0x8] sm:$0xff] %v368_v11  ;;  %v334_v19 = vsel %vm333_vm5, %v623_v51, %v330_v14 }
 0x140   : > { %377 = vst [vmem:[%s966_s21 + $0x10] sm:$0xff] %v369_v12  ;;  %v355_v20 = vmul.f32 %v334_v19, %v947_v28  ;;  %v356_v21 = vmul.f32 %v334_v19, %v949_v29  ;;  %v357_v22 = vmul.f32 %v334_v19, %v951_v31  ;;  %v358_v23 = vmul.f32 %v334_v19, %v953_v32 }
 0x141   : > { %378 = vst [vmem:[%s966_s21 + $0x18] sm:$0xff] %v370_v13 }
 0x142   : > { %v363_v28 = vmul.f32 %v355_v20, %v339_v15  ;;  %v364_v29 = vmul.f32 %v356_v21, %v340_v16  ;;  %v365_v30 = vmul.f32 %v357_v22, %v341_v17  ;;  %v366_v31 = vmul.f32 %v358_v23, %v342_v18 }
 0x144   : > { %v371_v32 = vadd.f32 %v363_v28, %v347_v24  ;;  %v372_v33 = vadd.f32 %v364_v29, %v348_v25  ;;  %v373_v34 = vadd.f32 %v365_v30, %v349_v26  ;;  %v374_v35 = vadd.f32 %v366_v31, %v350_v27 }
 0x146   : > { %379 = vst [vmem:[%s966_s21 + $0x20] sm:$0xff] %v371_v32 }
 0x147   : > { %380 = vst [vmem:[%s966_s21 + $0x28] sm:$0xff] %v372_v33 }
 0x148   : > { %381 = vst [vmem:[%s966_s21 + $0x30] sm:$0xff] %v373_v34 }
 0x149   : > { %382 = vst [vmem:[%s966_s21 + $0x38] sm:$0xff] %v374_v35 }
 0x14a   : > { %741 = shalt.err (!%p738_p0)
}
 0x14b   : > { %s806_s10 = smov 512   ;;  %s807_s24 = smov 32  }
 0x14c   : > { %543 = dma.vmem_to_hbm [thread:$0]  (%p910_p2), %s400_s6, 1024, %s402_s23, %s384_s27, %s806_s10, %s806_s10, %s807_s24  }
 0x14d PF: > { %s416_s18 = sand.u32 1, %s780_s12   ;;  %p557_p4 = pnand %p517_p10, %p875_p5 }
 0x14e   : > { %s417_s20 = scalar_lea.sflag [#allocation4], %s416_s18 }
 0x14f   : > { %p558_p6 = pneg %p557_p4 }
 0x151   : > { %775 = dma.done.wait (%p558_p6), %s417_s20, 1024  }
 0x152   : > { %777 = vsyncadd (%p558_p6), %s417_s20, 4294966272  ;;  %s20_s17 = sadd.s32 1, %s800_s17   ;;  %s1027_s12 = smov %s784_s13 }
 0x153   : > { %p17_p8 = scmp.ge.s32.totalorder %s20_s17, 4   ;;  %s1028_s13 = smov %s788_s14 }
 0x154   : > { %s1029_s14 = smov %s920_s25  ;;  %s1030_s15 = smov %s796_s16 }
 0x155   : > { %s1031_s16 = smov %s1033_s9  ;;  %19 = sbr.rel (!%p17_p8) target bundleno = 7 (0x7), region = 87 }
 0x15a   :  { %423 = vsyncpa [#allocation3], 1 }
 0x15b   :  { %425 = vsyncpa [#allocation3 + $0x1], 1 }
 0x15c   :  { %426 = vsyncpa [#allocation6], 1 }
 0x15d   :  { %427 = vsyncpa [#allocation4], 1 }
 0x15e   :  { %429 = vsyncpa [#allocation4 + $0x1], 1 }

</bundles_post_ra>
